<compile_context>
chip_gen: v6e
topology: v6e:2x2x1
jax: 0.10.0
libtpu: 0.0.40
codegen_flags: <defaults>
</compile_context>

<pallas_src>
import functools

import jax
import jax.numpy as jnp
from jax import lax
from jax.experimental import pallas as pl
from jax.experimental.pallas import tpu as pltpu

LANE = 128
SUBLANE = 8


def _round_up(x, m):
    return (x + m - 1) // m * m


def _pad2d(x, rows, cols):
    r, c = x.shape
    return jnp.pad(x, ((0, rows - r), (0, cols - c)))


# --------------------------------------------------------------------------
# Kernel
# --------------------------------------------------------------------------
def _fusion_kernel(x1_ref, x2_ref, w1_ref, w2_ref, wf1_ref, wf2_ref, vec_ref,
                   out_ref, *, n_fused, dd_pad, d_pad, c_pad):
    f32 = jnp.float32

    # Packed small-vector slab (one resident vreg tile).
    vecs = vec_ref[...]
    b_enc = vecs[0:1, :dd_pad]    # [b1 | b2 | 0...]
    gamma = vecs[1:2, :dd_pad]
    beta  = vecs[2:3, :dd_pad]
    bf1   = vecs[3:4, :d_pad]
    bf2   = vecs[4:5, :c_pad]

    # Encoders with the mean-pool folded into the weights; the two paths are
    # merged in the output column space so z == concat([z1, z2]) (padded).
    z = (jnp.dot(x1_ref[...], w1_ref[...], preferred_element_type=f32)
         + jnp.dot(x2_ref[...], w2_ref[...], preferred_element_type=f32)
         + b_enc)

    # LayerNorm over the logical 2*d_model features (padded lanes are zero).
    # eps = 1e-5, biased variance, var = E[z^2] - mu^2.
    inv_n = 1.0 / n_fused
    mu  = jnp.sum(z, axis=-1, keepdims=True) * inv_n
    ex2 = jnp.sum(z * z, axis=-1, keepdims=True) * inv_n
    inv_std = lax.rsqrt(ex2 - mu * mu + 1e-5)
    y = (z - mu) * inv_std * gamma + beta           # padded lanes -> 0

    # Linear(2D -> D) + ReLU.
    h = jnp.maximum(
        jnp.dot(y, wf1_ref[...], preferred_element_type=f32) + bf1, 0.0)

    # Dropout(0.2): identity in eval / inference mode.
    # TODO(synk): training-mode dropout mask (pltpu.prng_random_bits) not emitted.

    # Linear(D -> n_classes), lane-dense (padded to 128) output store.
    out_ref[...] = jnp.dot(h, wf2_ref[...], preferred_element_type=f32) + bf2


# --------------------------------------------------------------------------
# Parameter packing (done once, outside the hot path)
# --------------------------------------------------------------------------
def prepare_params(p, *, seq_15m, seq_daily, d_model, n_classes):
    """Fold the sequence mean-pool into the encoder weights, lay the two
    encoders out into the concatenated [z1 | z2] column space, zero-pad to
    lane-aligned shapes, and pack all small vectors into one (8, lanes) slab.
    Padding is zero so the math is unchanged."""
    d = d_model
    dd = 2 * d
    dd_pad = _round_up(dd, LANE)
    d_pad = _round_up(d, LANE)
    c_pad = _round_up(n_classes, LANE)
    vpad = max(dd_pad, d_pad, c_pad)

    # mean_s(x[b,s,:]) @ w  ==  x.reshape(B, S*F) @ tile(w / S, (S, 1))
    w1e = jnp.pad(jnp.tile(p["w1"] / seq_15m, (seq_15m, 1)),
                  ((0, 0), (0, dd_pad - d)))          # cols [0:d]   <- enc 15m
    w2e = jnp.pad(jnp.tile(p["w2"] / seq_daily, (seq_daily, 1)),
                  ((0, 0), (d, dd_pad - dd)))         # cols [d:2d]  <- enc daily

    wf1 = _pad2d(p["wf1"], dd_pad, d_pad)             # Linear(2D -> D)
    wf2 = _pad2d(p["wf2"], d_pad, c_pad)              # Linear(D -> n_classes)

    def row(v):
        v = jnp.asarray(v, jnp.float32).reshape(1, -1)
        return jnp.pad(v, ((0, 0), (0, vpad - v.shape[1])))

    vecs = jnp.concatenate([
        row(jnp.concatenate([p["b1"], p["b2"]])),     # encoder bias [b1 | b2]
        row(p["gamma"]), row(p["beta"]),
        row(p["bf1"]), row(p["bf2"]),
        jnp.zeros((3, vpad), jnp.float32),
    ], axis=0)                                        # (8, vpad)

    return {"w1e": w1e, "w2e": w2e, "wf1": wf1, "wf2": wf2, "vecs": vecs}


# --------------------------------------------------------------------------
# Wrapper
# --------------------------------------------------------------------------
def _pick_tb(b8, block_b):
    if block_b is not None:
        return max(SUBLANE, _round_up(block_b, SUBLANE))
    tb = min(1024, b8)
    if b8 > SUBLANE:
        # Ensure >= 2 grid steps so the batch can shard across both
        # TensorCores on v7x (no effect on single-TC v5e/v6e).
        tb = min(tb, _round_up(pl.cdiv(b8, 2), SUBLANE))
    return max(SUBLANE, tb)


def multi_scale_fusion_transformer(x_15m, x_daily, packed, *, d_model,
                                   n_classes, block_b=None):
    B, S1, F1 = x_15m.shape
    _, S2, F2 = x_daily.shape
    K1, K2 = S1 * F1, S2 * F2
    assert packed["w1e"].shape[0] == K1 and packed["w2e"].shape[0] == K2

    dd_pad = packed["w1e"].shape[1]
    d_pad, c_pad = packed["wf2"].shape
    vpad = packed["vecs"].shape[1]

    # Raw sequences, flattened (layout-preserving reshape — no data movement).
    # No pooling, no feature-lane padding, no batch-tile padding in HBM.
    x1 = x_15m.reshape(B, K1).astype(jnp.float32)
    x2 = x_daily.reshape(B, K2).astype(jnp.float32)

    # Pad batch only to the 8-row sublane granule (skipped when already aligned).
    b8 = _round_up(B, SUBLANE)
    if b8 != B:
        x1 = jnp.pad(x1, ((0, b8 - B), (0, 0)))
        x2 = jnp.pad(x2, ((0, b8 - B), (0, 0)))

    tb = _pick_tb(b8, block_b)
    grid = (pl.cdiv(b8, tb),)

    kernel = functools.partial(_fusion_kernel, n_fused=2 * d_model,
                               dd_pad=dd_pad, d_pad=d_pad, c_pad=c_pad)
    resident = lambda i: (0, 0)   # parameters pinned across batch tiles

    out = pl.pallas_call(
        kernel,
        out_shape=jax.ShapeDtypeStruct((b8, c_pad), jnp.float32),
        grid=grid,
        in_specs=[
            pl.BlockSpec((tb, K1), lambda i: (i, 0)),      # raw x_15m rows
            pl.BlockSpec((tb, K2), lambda i: (i, 0)),      # raw x_daily rows
            pl.BlockSpec((K1, dd_pad), resident),          # enc-15m weights
            pl.BlockSpec((K2, dd_pad), resident),          # enc-daily weights
            pl.BlockSpec((dd_pad, d_pad), resident),       # fusion Linear 1
            pl.BlockSpec((d_pad, c_pad), resident),        # fusion Linear 2
            pl.BlockSpec((8, vpad), resident),             # packed vectors
        ],
        out_specs=pl.BlockSpec((tb, c_pad), lambda i: (i, 0)),
        compiler_params=pltpu.CompilerParams(
            dimension_semantics=("parallel",)),
    )(x1, x2, packed["w1e"], packed["w2e"], packed["wf1"], packed["wf2"],
      packed["vecs"])

    return out[:B, :n_classes]


# --------------------------------------------------------------------------
# Logical (unpadded) parameters + pure-JAX reference
# --------------------------------------------------------------------------
def make_params(key, f1, f2, d_model, n_classes):
    ks = jax.random.split(key, 10)
    s = 0.1
    return {
        "w1":    s * jax.random.normal(ks[0], (f1, d_model), jnp.float32),
        "b1":    s * jax.random.normal(ks[1], (d_model,), jnp.float32),
        "w2":    s * jax.random.normal(ks[2], (f2, d_model), jnp.float32),
        "b2":    s * jax.random.normal(ks[3], (d_model,), jnp.float32),
        "gamma": 1.0 + s * jax.random.normal(ks[4], (2 * d_model,), jnp.float32),
        "beta":  s * jax.random.normal(ks[5], (2 * d_model,), jnp.float32),
        "wf1":   s * jax.random.normal(ks[6], (2 * d_model, d_model), jnp.float32),
        "bf1":   s * jax.random.normal(ks[7], (d_model,), jnp.float32),
        "wf2":   s * jax.random.normal(ks[8], (d_model, n_classes), jnp.float32),
        "bf2":   s * jax.random.normal(ks[9], (n_classes,), jnp.float32),
    }


def _reference(x_15m, x_daily, p):
    z1 = jnp.mean(x_15m, axis=1) @ p["w1"] + p["b1"]
    z2 = jnp.mean(x_daily, axis=1) @ p["w2"] + p["b2"]
    fused = jnp.concatenate([z1, z2], axis=-1)
    mu = jnp.mean(fused, axis=-1, keepdims=True)
    var = jnp.mean((fused - mu) ** 2, axis=-1, keepdims=True)
    y = (fused - mu) * jax.lax.rsqrt(var + 1e-5) * p["gamma"] + p["beta"]
    h = jnp.maximum(y @ p["wf1"] + p["bf1"], 0.0)
    return h @ p["wf2"] + p["bf2"]


if __name__ == "__main__":
    # Small deterministic example: batch=2, seq=8, features=4, d_model=32,
    # n_classes=15.
    B, S1, S2, F1, F2 = 2, 8, 8, 4, 4
    D_MODEL, N_CLASSES = 32, 15

    key = jax.random.PRNGKey(0)
    k_x1, k_x2, k_p = jax.random.split(key, 3)
    x_15m = jax.random.normal(k_x1, (B, S1, F1), jnp.float32)
    x_daily = jax.random.normal(k_x2, (B, S2, F2), jnp.float32)

    params = make_params(k_p, F1, F2, D_MODEL, N_CLASSES)
    packed = prepare_params(params, seq_15m=S1, seq_daily=S2,
                            d_model=D_MODEL, n_classes=N_CLASSES)

    out = multi_scale_fusion_transformer(
        x_15m, x_daily, packed, d_model=D_MODEL, n_classes=N_CLASSES)
    out = jax.block_until_ready(out)

    ref = _reference(x_15m, x_daily, params)
    assert out.shape == (B, N_CLASSES)
    err = float(jnp.max(jnp.abs(out - ref)))
    assert jnp.allclose(out, ref, atol=2e-4, rtol=2e-4), f"max|err|={err}"
    print("KERNEL_OK")
</pallas_src>

<mosaic_0001>
module attributes {stable_mosaic.version = 11 : i64} {
  func.func @_fusion_kernel(%arg0: i32, %arg1: memref<8x32xf32, #tpu.memory_space<vmem>>, %arg2: memref<8x32xf32, #tpu.memory_space<vmem>>, %arg3: memref<32x128xf32, #tpu.memory_space<vmem>>, %arg4: memref<32x128xf32, #tpu.memory_space<vmem>>, %arg5: memref<128x128xf32, #tpu.memory_space<vmem>>, %arg6: memref<128x128xf32, #tpu.memory_space<vmem>>, %arg7: memref<8x128xf32, #tpu.memory_space<vmem>>, %arg8: memref<8x128xf32, #tpu.memory_space<vmem>>) attributes {dimension_semantics = [#tpu.dimension_semantics<parallel>], iteration_bounds = array<i64: 1>, scalar_prefetch = 0 : i64, scratch_operands = 0 : i64, tpu.core_type = #tpu.core_type<tc>, window_params = [{transform_indices = @transform_0, window_bounds = array<i64: 8, 32>}, {transform_indices = @transform_1, window_bounds = array<i64: 8, 32>}, {pipeline_mode = #tpu.pipeline_mode<synchronous>, transform_indices = @transform_2, window_bounds = array<i64: 32, 128>}, {pipeline_mode = #tpu.pipeline_mode<synchronous>, transform_indices = @transform_3, window_bounds = array<i64: 32, 128>}, {pipeline_mode = #tpu.pipeline_mode<synchronous>, transform_indices = @transform_4, window_bounds = array<i64: 128, 128>}, {pipeline_mode = #tpu.pipeline_mode<synchronous>, transform_indices = @transform_5, window_bounds = array<i64: 128, 128>}, {pipeline_mode = #tpu.pipeline_mode<synchronous>, transform_indices = @transform_6, window_bounds = array<i64: 8, 128>}, {transform_indices = @transform_7, window_bounds = array<i64: 8, 128>}]} {
    %c0 = arith.constant 0 : index
    %c0_0 = arith.constant 0 : index
    %0 = vector.load %arg7[%c0, %c0_0] : memref<8x128xf32, #tpu.memory_space<vmem>>, vector<8x128xf32>
    %1 = vector.extract_strided_slice %0 {offsets = [0, 0], sizes = [1, 128], strides = [1, 1]} : vector<8x128xf32> to vector<1x128xf32>
    %2 = vector.extract_strided_slice %0 {offsets = [1, 0], sizes = [1, 128], strides = [1, 1]} : vector<8x128xf32> to vector<1x128xf32>
    %3 = vector.extract_strided_slice %0 {offsets = [2, 0], sizes = [1, 128], strides = [1, 1]} : vector<8x128xf32> to vector<1x128xf32>
    %4 = vector.extract_strided_slice %0 {offsets = [3, 0], sizes = [1, 128], strides = [1, 1]} : vector<8x128xf32> to vector<1x128xf32>
    %5 = vector.extract_strided_slice %0 {offsets = [4, 0], sizes = [1, 128], strides = [1, 1]} : vector<8x128xf32> to vector<1x128xf32>
    %c0_1 = arith.constant 0 : index
    %c0_2 = arith.constant 0 : index
    %6 = vector.load %arg1[%c0_1, %c0_2] : memref<8x32xf32, #tpu.memory_space<vmem>>, vector<8x32xf32>
    %c0_3 = arith.constant 0 : index
    %c0_4 = arith.constant 0 : index
    %7 = vector.load %arg3[%c0_3, %c0_4] : memref<32x128xf32, #tpu.memory_space<vmem>>, vector<32x128xf32>
    %cst = arith.constant dense<0.000000e+00> : vector<8x128xf32>
    %8 = tpu.matmul %6, %7, %cst {dimension_numbers = #tpu.dot_dimension_numbers<[1], [0], [0], [1], [0, 0, 1, 1], [], []>} : vector<8x32xf32>, vector<32x128xf32>, vector<8x128xf32> -> vector<8x128xf32>
    %c0_5 = arith.constant 0 : index
    %c0_6 = arith.constant 0 : index
    %9 = vector.load %arg2[%c0_5, %c0_6] : memref<8x32xf32, #tpu.memory_space<vmem>>, vector<8x32xf32>
    %c0_7 = arith.constant 0 : index
    %c0_8 = arith.constant 0 : index
    %10 = vector.load %arg4[%c0_7, %c0_8] : memref<32x128xf32, #tpu.memory_space<vmem>>, vector<32x128xf32>
    %cst_9 = arith.constant dense<0.000000e+00> : vector<8x128xf32>
    %11 = tpu.matmul %9, %10, %cst_9 {dimension_numbers = #tpu.dot_dimension_numbers<[1], [0], [0], [1], [0, 0, 1, 1], [], []>} : vector<8x32xf32>, vector<32x128xf32>, vector<8x128xf32> -> vector<8x128xf32>
    %12 = arith.addf %8, %11 : vector<8x128xf32>
    %13 = vector.broadcast %1 : vector<1x128xf32> to vector<8x128xf32>
    %14 = arith.addf %12, %13 : vector<8x128xf32>
    %cst_10 = arith.constant dense<0.000000e+00> : vector<8xf32>
    %15 = vector.multi_reduction <add>, %14, %cst_10 [1] : vector<8x128xf32> to vector<8xf32>
    %16 = vector.shape_cast %15 : vector<8xf32> to vector<8x1xf32>
    %cst_11 = arith.constant 1.562500e-02 : f32
    %17 = vector.broadcast %cst_11 : f32 to vector<8x1xf32>
    %18 = arith.mulf %16, %17 : vector<8x1xf32>
    %19 = arith.mulf %14, %14 : vector<8x128xf32>
    %cst_12 = arith.constant dense<0.000000e+00> : vector<8xf32>
    %20 = vector.multi_reduction <add>, %19, %cst_12 [1] : vector<8x128xf32> to vector<8xf32>
    %21 = vector.shape_cast %20 : vector<8xf32> to vector<8x1xf32>
    %cst_13 = arith.constant 1.562500e-02 : f32
    %22 = vector.broadcast %cst_13 : f32 to vector<8x1xf32>
    %23 = arith.mulf %21, %22 : vector<8x1xf32>
    %24 = arith.mulf %18, %18 : vector<8x1xf32>
    %25 = arith.subf %23, %24 : vector<8x1xf32>
    %cst_14 = arith.constant 9.99999974E-6 : f32
    %26 = vector.broadcast %cst_14 : f32 to vector<8x1xf32>
    %27 = arith.addf %25, %26 : vector<8x1xf32>
    %28 = math.rsqrt %27 : vector<8x1xf32>
    %29 = vector.broadcast %18 : vector<8x1xf32> to vector<8x128xf32>
    %30 = arith.subf %14, %29 : vector<8x128xf32>
    %31 = vector.broadcast %28 : vector<8x1xf32> to vector<8x128xf32>
    %32 = arith.mulf %30, %31 : vector<8x128xf32>
    %33 = vector.broadcast %2 : vector<1x128xf32> to vector<8x128xf32>
    %34 = arith.mulf %32, %33 : vector<8x128xf32>
    %35 = vector.broadcast %3 : vector<1x128xf32> to vector<8x128xf32>
    %36 = arith.addf %34, %35 : vector<8x128xf32>
    %c0_15 = arith.constant 0 : index
    %c0_16 = arith.constant 0 : index
    %37 = vector.load %arg5[%c0_15, %c0_16] : memref<128x128xf32, #tpu.memory_space<vmem>>, vector<128x128xf32>
    %cst_17 = arith.constant dense<0.000000e+00> : vector<8x128xf32>
    %38 = tpu.matmul %36, %37, %cst_17 {dimension_numbers = #tpu.dot_dimension_numbers<[1], [0], [0], [1], [0, 0, 1, 1], [], []>} : vector<8x128xf32>, vector<128x128xf32>, vector<8x128xf32> -> vector<8x128xf32>
    %39 = vector.broadcast %4 : vector<1x128xf32> to vector<8x128xf32>
    %40 = arith.addf %38, %39 : vector<8x128xf32>
    %cst_18 = arith.constant 0.000000e+00 : f32
    %41 = vector.broadcast %cst_18 : f32 to vector<8x128xf32>
    %42 = arith.maximumf %40, %41 : vector<8x128xf32>
    %c0_19 = arith.constant 0 : index
    %c0_20 = arith.constant 0 : index
    %43 = vector.load %arg6[%c0_19, %c0_20] : memref<128x128xf32, #tpu.memory_space<vmem>>, vector<128x128xf32>
    %cst_21 = arith.constant dense<0.000000e+00> : vector<8x128xf32>
    %44 = tpu.matmul %42, %43, %cst_21 {dimension_numbers = #tpu.dot_dimension_numbers<[1], [0], [0], [1], [0, 0, 1, 1], [], []>} : vector<8x128xf32>, vector<128x128xf32>, vector<8x128xf32> -> vector<8x128xf32>
    %45 = vector.broadcast %5 : vector<1x128xf32> to vector<8x128xf32>
    %46 = arith.addf %44, %45 : vector<8x128xf32>
    %c0_22 = arith.constant 0 : index
    %c0_23 = arith.constant 0 : index
    %47 = vector.load %arg8[%c0_22, %c0_23] : memref<8x128xf32, #tpu.memory_space<vmem>>, vector<8x128xf32>
    tpu.vector_store %arg8[%c0_22, %c0_23], %46 {strides = array<i32>} : memref<8x128xf32, #tpu.memory_space<vmem>>, vector<8x128xf32>,
    return
  }
  func.func @transform_0(%arg0: i32) -> (i32, i32) {
    %c0_i32 = arith.constant 0 : i32
    %c0_i32_0 = arith.constant 0 : i32
    return %arg0, %c0_i32 : i32, i32
  }
  func.func @transform_1(%arg0: i32) -> (i32, i32) {
    %c0_i32 = arith.constant 0 : i32
    %c0_i32_0 = arith.constant 0 : i32
    return %arg0, %c0_i32 : i32, i32
  }
  func.func @transform_2(%arg0: i32) -> (i32, i32) {
    %c0_i32 = arith.constant 0 : i32
    %c0_i32_0 = arith.constant 0 : i32
    %c0_i32_1 = arith.constant 0 : i32
    return %c0_i32, %c0_i32_0 : i32, i32
  }
  func.func @transform_3(%arg0: i32) -> (i32, i32) {
    %c0_i32 = arith.constant 0 : i32
    %c0_i32_0 = arith.constant 0 : i32
    %c0_i32_1 = arith.constant 0 : i32
    return %c0_i32, %c0_i32_0 : i32, i32
  }
  func.func @transform_4(%arg0: i32) -> (i32, i32) {
    %c0_i32 = arith.constant 0 : i32
    %c0_i32_0 = arith.constant 0 : i32
    %c0_i32_1 = arith.constant 0 : i32
    return %c0_i32, %c0_i32_0 : i32, i32
  }
  func.func @transform_5(%arg0: i32) -> (i32, i32) {
    %c0_i32 = arith.constant 0 : i32
    %c0_i32_0 = arith.constant 0 : i32
    %c0_i32_1 = arith.constant 0 : i32
    return %c0_i32, %c0_i32_0 : i32, i32
  }
  func.func @transform_6(%arg0: i32) -> (i32, i32) {
    %c0_i32 = arith.constant 0 : i32
    %c0_i32_0 = arith.constant 0 : i32
    %c0_i32_1 = arith.constant 0 : i32
    return %c0_i32, %c0_i32_0 : i32, i32
  }
  func.func @transform_7(%arg0: i32) -> (i32, i32) {
    %c0_i32 = arith.constant 0 : i32
    %c0_i32_0 = arith.constant 0 : i32
    return %arg0, %c0_i32 : i32, i32
  }
}

</mosaic_0001>

<bundles_post_ra>
// kernel: tpu_custom_call.1
= control target key start
LH: loop header
LB: loop body
LE: loop exit
PB: predicated region body
PF: predicated region fallthrough
CT: control target
= control target key end

     0   :  { %12 = vsyncpa [#allocation3], 0  ;;  %s947_s0 = inlined_call_operand.hbm [shape: f32[8,32], index: 0, kind: input, shape index: {}]   ;;  %s948_s1 = inlined_call_operand.hbm [shape: f32[8,32], index: 1, kind: input, shape index: {}]   ;;  %s949_s2 = inlined_call_operand.hbm [shape: f32[32,128], index: 2, kind: input, shape index: {}]   ;;  %s950_s3 = inlined_call_operand.hbm [shape: f32[32,128], index: 3, kind: input, shape index: {}]   ;;  %s951_s4 = inlined_call_operand.hbm [shape: f32[128,128], index: 4, kind: input, shape index: {}]   ;;  %s952_s5 = inlined_call_operand.hbm [shape: f32[128,128], index: 5, kind: input, shape index: {}]   ;;  %s953_s6 = inlined_call_operand.vmem [shape: f32[8,128], index: 6, kind: input, shape index: {}]   ;;  %s954_s7 = inlined_call_operand.hbm [shape: f32[8,128], index: 7, kind: output, shape index: {}]  }
   0x1   :  { %13 = vsyncpa [#allocation6], 0 }
   0x2   :  { %14 = vsyncpa [#allocation9], 0 }
   0x3   :  { %15 = vsyncpa [#allocation12], 0 }
   0x4   :  { %16 = vsyncpa [#allocation4], 0  ;;  %s792_s24 = smov [#allocation5]  }
   0x5   :  { %s33_s25 = sshll.u32 %s792_s24, 4  ;;  %s34_s25 = int_to_ptr.vmem [resolvable:$true] %s33_s25 }
   0x6   :  { %s650_s26 = scalar_lea.vmem %s34_s25, 128  ;;  %p655_p1 = scmp.lt.s32.totalorder %s34_s25, %s34_s25 }
   0x7   :  { %p651_p0 = scmp.ne.s32.totalorder %s34_s25, %s650_s26  ;;  %p656_p2 = scmp.lt.s32.totalorder %s650_s26, %s650_s26 }
   0x9   :  { %p657_p3 = por %p656_p2, %p655_p1 }
   0xb   :  { %p658_p4 = pnand %p657_p3, %p651_p0 }
   0xd   :  { %661 = shalt.err (!%p658_p4)
}
   0xe   :  { %36 = dma.hbm_to_vmem [thread:$0]  %s948_s1, 128, %s34_s25, [#allocation6]  }
   0xf   :  { %s793_s29 = smov [#allocation8]   ;;  %s794_s8 = smov [#allocation2]  }
  0x10   :  { %s54_s30 = sshll.u32 %s793_s29, 4  ;;  %s23_s9 = sshll.u32 %s794_s8, 4  ;;  %s55_s30 = int_to_ptr.vmem [resolvable:$true] %s54_s30  ;;  %s24_s9 = int_to_ptr.vmem [resolvable:$true] %s23_s9 }
  0x11   :  { %s670_s10 = scalar_lea.vmem %s55_s30, 512  ;;  %p675_p6 = scmp.lt.s32.totalorder %s55_s30, %s55_s30 }
  0x12   :  { %p671_p5 = scmp.ne.s32.totalorder %s55_s30, %s670_s10  ;;  %p676_p7 = scmp.lt.s32.totalorder %s670_s10, %s670_s10 }
  0x14   :  { %p677_p8 = por %p676_p7, %p675_p6 }
  0x16   :  { %p678_p9 = pnand %p677_p8, %p671_p5 }
  0x18   :  { %681 = shalt.err (!%p678_p9)
}
  0x19   :  { %s795_s11 = smov 128   ;;  %s796_s12 = smov 8  }
  0x1a   :  { %60 = dma.hbm_to_vmem [thread:$0]  %s950_s3, 512, %s55_s30, [#allocation9], %s795_s11, %s795_s11, %s796_s12  }
  0x1b   :  { %s690_s1 = scalar_lea.vmem %s24_s9, 128  ;;  %p695_p11 = scmp.lt.s32.totalorder %s24_s9, %s24_s9 }
  0x1c   :  { %p691_p10 = scmp.ne.s32.totalorder %s24_s9, %s690_s1  ;;  %p696_p12 = scmp.lt.s32.totalorder %s690_s1, %s690_s1 }
  0x1e   :  { %p697_p13 = por %p696_p12, %p695_p11 }
  0x20   :  { %p698_p0 = pnand %p697_p13, %p691_p10 }
  0x22   :  { %701 = shalt.err (!%p698_p0)
}
  0x23   :  { %26 = dma.hbm_to_vmem [thread:$0]  %s947_s0, 128, %s24_s9, [#allocation3]  }
  0x24   :  { %s797_s17 = smov [#allocation7]   ;;  %s798_s19 = smov [#allocation10]  }
  0x25   :  { %s42_s18 = sshll.u32 %s797_s17, 4  ;;  %s66_s20 = sshll.u32 %s798_s19, 4  ;;  %s43_s18 = int_to_ptr.vmem [resolvable:$true] %s42_s18  ;;  %s67_s20 = int_to_ptr.vmem [resolvable:$true] %s66_s20 }
  0x26   :  { %s710_s21 = scalar_lea.vmem %s43_s18, 512  ;;  %p715_p2 = scmp.lt.s32.totalorder %s43_s18, %s43_s18 }
  0x27   :  { %p711_p1 = scmp.ne.s32.totalorder %s43_s18, %s710_s21  ;;  %p716_p3 = scmp.lt.s32.totalorder %s710_s21, %s710_s21 }
  0x29   :  { %p717_p4 = por %p716_p3, %p715_p2 }
  0x2b   :  { %p718_p5 = pnand %p717_p4, %p711_p1 }
  0x2d   :  { %721 = shalt.err (!%p718_p5)
}
  0x2e   :  { %48 = dma.hbm_to_vmem [thread:$0]  %s949_s2, 512, %s43_s18, [#allocation6], %s795_s11, %s795_s11, %s796_s12  }
  0x2f   :  { %s730_s0 = scalar_lea.vmem %s67_s20, 2048  ;;  %p735_p7 = scmp.lt.s32.totalorder %s67_s20, %s67_s20 }
  0x30   :  { %p731_p6 = scmp.ne.s32.totalorder %s67_s20, %s730_s0  ;;  %p736_p8 = scmp.lt.s32.totalorder %s730_s0, %s730_s0 }
  0x32   :  { %p737_p9 = por %p736_p8, %p735_p7 }
  0x34   :  { %p738_p10 = pnand %p737_p9, %p731_p6 }
  0x36   :  { %741 = shalt.err (!%p738_p10)
}
  0x37   :  { %72 = dma.hbm_to_vmem [thread:$0]  %s951_s4, 2048, %s67_s20, [#allocation9], %s795_s11, %s795_s11, %s796_s12  }
  0x38   :  { %s799_s25 = smov [#allocation11]  }
  0x39   :  { %s78_s26 = sshll.u32 %s799_s25, 4  ;;  %s79_s26 = int_to_ptr.vmem [resolvable:$true] %s78_s26 }
  0x3a   :  { %s750_s27 = scalar_lea.vmem %s79_s26, 2048  ;;  %p755_p12 = scmp.lt.s32.totalorder %s79_s26, %s79_s26 }
  0x3b   :  { %p751_p11 = scmp.ne.s32.totalorder %s79_s26, %s750_s27  ;;  %p756_p13 = scmp.lt.s32.totalorder %s750_s27, %s750_s27 }
  0x3d   :  { %p757_p0 = por %p756_p13, %p755_p12 }
  0x3f   :  { %p758_p1 = pnand %p757_p0, %p751_p11 }
  0x41   :  { %761 = shalt.err (!%p758_p1)
}
  0x42   :  { %84 = dma.hbm_to_vmem [thread:$0]  %s952_s5, 2048, %s79_s26, [#allocation12], %s795_s11, %s795_s11, %s796_s12  }
  0x43   :  { %782 = dma.done.wait [#allocation3], 128  }
  0x44   :  { %783 = vsyncadd [#allocation3], 4294967168 }
  0x45   :  { %784 = dma.done.wait [#allocation6], 640  }
  0x46   :  { %785 = vsyncadd [#allocation6], 4294966656 }
  0x47   :  { %786 = dma.done.wait [#allocation9], 2560  }
  0x48   :  { %787 = vsyncadd [#allocation9], 4294964736 }
  0x49   :  { %788 = dma.done.wait [#allocation12], 2048  }
  0x4a   :  { %789 = vsyncadd [#allocation12], 4294965248  ;;  %v800_v0 = vmov 0.0   ;;  %vm801_vm0 = vmmov 0   ;;  %v115_v1 = vld [vmem:[#allocation8 + $0x18] sm:$0xff]  ;;  %v114_v3 = vld [vmem:[#allocation8 + $0x10] sm:$0xff]  ;;  %v263_v12 = vlaneseq }
  0x4b   :  { %537 = vmatprep.subr.mxu0 %v800_v0  ;;  %548 = vmatprep.subr.mxu1 %v800_v0  ;;  %v110_v2 = vld [vmem:[#allocation7 + $0x18] sm:$0xff]  ;;  %v109_v4 = vld [vmem:[#allocation7 + $0x10] sm:$0xff]  ;;  %v113_v5 = vld [vmem:[#allocation8 + $0x8] sm:$0xff]  ;;  %vm116_vm1 = vcmask 261120  }
  0x4c   :  { %545 = vmatprep.mubr.msk.f32.mxu0 %vm801_vm0, %v800_v0  ;;  %556 = vmatprep.mubr.msk.f32.mxu1 %vm801_vm0, %v800_v0  ;;  %v108_v6 = vld [vmem:[#allocation7 + $0x8] sm:$0xff]  ;;  %v112_v7 = vld [vmem:[#allocation8] sm:$0xff]  ;;  %v111_v9 = vld [vmem:[#allocation5] sm:$0xff]  ;;  %v892_v13 = vshrl.u32 %v263_v12, 7 }
  0x4d   :  { %538 = vmatpush3.msra.mxu0 %v115_v1  ;;  %549 = vmatpush3.msra.mxu1 %v110_v2  ;;  %v107_v8 = vld [vmem:[#allocation7] sm:$0xff]  ;;  %v106_v10 = vld [vmem:[#allocation2] sm:$0xff]  ;;  %v306_v11 = vld [vmem:[#allocation10 + $0x78] sm:$0xff] }
  0x4e   :  { %539 = vmatprep.subr.mxu0 %v800_v0  ;;  %550 = vmatprep.subr.mxu1 %v800_v0  ;;  %v265_v14 = vsub.s32 0, %v892_v13  ;;  %v898_v15 = vld [vmem:[%s953_s6] sm:$0xff]  ;;  %v304_v25 = vld [vmem:[#allocation10 + $0x68] sm:$0xff]  ;;  %v303_v26 = vld [vmem:[#allocation10 + $0x60] sm:$0xff]  ;;  %v283_v59 = vsub.s32 1, %v892_v13  ;;  %v288_v60 = vsub.s32 2, %v892_v13 }
  0x4f   :  { %540 = vmatpush3.msra.mxu0 %v114_v3  ;;  %551 = vmatpush3.msra.mxu1 %v109_v4  ;;  %v305_v24 = vld [vmem:[#allocation10 + $0x70] sm:$0xff]  ;;  %v302_v27 = vld [vmem:[#allocation10 + $0x58] sm:$0xff]  ;;  %v300_v29 = vld [vmem:[#allocation10 + $0x48] sm:$0xff]  ;;  %s802_s6 = smov [#allocation13]  }
  0x50   :  { %541 = vmatprep.subr.mxu0 %v800_v0  ;;  %552 = vmatprep.subr.mxu1 %v800_v0  ;;  %v266_v16 = vrot.slane %v898_v15, %v265_v14  ;;  %v301_v28 = vld [vmem:[#allocation10 + $0x50] sm:$0xff]  ;;  %v299_v30 = vld [vmem:[#allocation10 + $0x40] sm:$0xff]  ;;  %v298_v31 = vld [vmem:[#allocation10 + $0x38] sm:$0xff]  ;;  %v284_v62 = vrot.slane %v898_v15, %v283_v59  ;;  %v289_v2 = vrot.slane %v898_v15, %v288_v60  ;;  %s479_s29 = sshll.u32 %s802_s6, 4  ;;  %s480_s29 = int_to_ptr.vmem [resolvable:$true] %s479_s29 }
  0x51   :  { %542 = vmatpush3.msra.mxu0 %v113_v5  ;;  %553 = vmatpush3.msra.mxu1 %v108_v6  ;;  %v297_v32 = vld [vmem:[#allocation10 + $0x30] sm:$0xff]  ;;  %v296_v33 = vld [vmem:[#allocation10 + $0x28] sm:$0xff]  ;;  %v295_v34 = vld [vmem:[#allocation10 + $0x20] sm:$0xff]  ;;  %s762_s30 = scalar_lea.vmem %s480_s29, 128  ;;  %p767_p3 = scmp.lt.s32.totalorder %s480_s29, %s480_s29 }
  0x52   :  { %543 = vmatprep.subr.mxu0 %v800_v0  ;;  %554 = vmatprep.subr.mxu1 %v800_v0  ;;  %v294_v35 = vld [vmem:[#allocation10 + $0x18] sm:$0xff]  ;;  %v293_v36 = vld [vmem:[#allocation10 + $0x10] sm:$0xff]  ;;  %v292_v37 = vld [vmem:[#allocation10 + $0x8] sm:$0xff]  ;;  %p763_p2 = scmp.ne.s32.totalorder %s480_s29, %s762_s30  ;;  %p768_p4 = scmp.lt.s32.totalorder %s762_s30, %s762_s30 }
  0x53   :  { %544 = vmatpush3.msra.mxu0 %v112_v7  ;;  %555 = vmatpush3.msra.mxu1 %v107_v8  ;;  %v291_v38 = vld [vmem:[#allocation10] sm:$0xff]  ;;  %v397_v39 = vld [vmem:[#allocation11 + $0x78] sm:$0xff]  ;;  %v396_v40 = vld [vmem:[#allocation11 + $0x70] sm:$0xff]  ;;  %v309_v8 = vsub.s32 3, %v892_v13 }
  0x54   :  { %546 = vmatmul.mubr.msk.f32.vlgmr.msra.gmra.mxu0 %vm116_vm1, %v111_v9  ;;  %557 = vmatmul.mubr.msk.f32.vlgmr.msra.gmra.mxu1 %vm116_vm1, %v106_v10  ;;  %v395_v41 = vld [vmem:[#allocation11 + $0x68] sm:$0xff]  ;;  %v394_v42 = vld [vmem:[#allocation11 + $0x60] sm:$0xff]  ;;  %v393_v43 = vld [vmem:[#allocation11 + $0x58] sm:$0xff]  ;;  %p769_p5 = por %p768_p4, %p767_p3 }
  0x55   :  { %559 = vmatprep.subr.mxu0 %v800_v0  ;;  %591 = vmatprep.mubr.msk.f32.mxu0 %vm801_vm0, %v800_v0  ;;  %v392_v44 = vld [vmem:[#allocation11 + $0x50] sm:$0xff]  ;;  %v391_v45 = vld [vmem:[#allocation11 + $0x48] sm:$0xff]  ;;  %v390_v46 = vld [vmem:[#allocation11 + $0x40] sm:$0xff]  ;;  %v310_v9 = vrot.slane %v898_v15, %v309_v8 }
  0x56   :  { %594 = vmatprep.subr.mxu1 %v800_v0  ;;  %626 = vmatprep.mubr.msk.f32.mxu1 %vm801_vm0, %v800_v0  ;;  %v389_v47 = vld [vmem:[#allocation11 + $0x38] sm:$0xff]  ;;  %v388_v48 = vld [vmem:[#allocation11 + $0x30] sm:$0xff]  ;;  %v387_v49 = vld [vmem:[#allocation11 + $0x28] sm:$0xff]  ;;  %p770_p6 = pnand %p769_p5, %p763_p2 }
  0x57   :  { %560 = vmatpush3.msra.mxu0 %v306_v11  ;;  %595 = vmatpush3.msra.mxu1 %v397_v39  ;;  %v386_v50 = vld [vmem:[#allocation11 + $0x20] sm:$0xff]  ;;  %v385_v51 = vld [vmem:[#allocation11 + $0x18] sm:$0xff]  ;;  %v384_v5 = vld [vmem:[#allocation11 + $0x10] sm:$0xff] }
  0x58   :  { %561 = vmatprep.subr.mxu0 %v800_v0  ;;  %596 = vmatprep.subr.mxu1 %v800_v0  ;;  %v383_v6 = vld [vmem:[#allocation11 + $0x8] sm:$0xff]  ;;  %v382_v7 = vld [vmem:[#allocation11] sm:$0xff] }
  0x59   :  { %562 = vmatpush3.msra.mxu0 %v305_v24  ;;  %597 = vmatpush3.msra.mxu1 %v396_v40 }
  0x5a   :  { %563 = vmatprep.subr.mxu0 %v800_v0  ;;  %598 = vmatprep.subr.mxu1 %v800_v0 }
  0x5b   :  { %564 = vmatpush3.msra.mxu0 %v304_v25  ;;  %599 = vmatpush3.msra.mxu1 %v395_v41 }
  0x5c   :  { %565 = vmatprep.subr.mxu0 %v800_v0  ;;  %600 = vmatprep.subr.mxu1 %v800_v0 }
  0x5d   :  { %566 = vmatpush3.msra.mxu0 %v303_v26  ;;  %601 = vmatpush3.msra.mxu1 %v394_v42 }
  0x5e   :  { %567 = vmatprep.subr.mxu0 %v800_v0  ;;  %602 = vmatprep.subr.mxu1 %v800_v0 }
  0x5f   :  { %568 = vmatpush3.msra.mxu0 %v302_v27  ;;  %603 = vmatpush3.msra.mxu1 %v393_v43 }
  0x60   :  { %569 = vmatprep.subr.mxu0 %v800_v0  ;;  %604 = vmatprep.subr.mxu1 %v800_v0 }
  0x61   :  { %570 = vmatpush3.msra.mxu0 %v301_v28  ;;  %605 = vmatpush3.msra.mxu1 %v392_v44 }
  0x62   :  { %571 = vmatprep.subr.mxu0 %v800_v0  ;;  %606 = vmatprep.subr.mxu1 %v800_v0 }
  0x63   :  { %572 = vmatpush3.msra.mxu0 %v300_v29  ;;  %607 = vmatpush3.msra.mxu1 %v391_v45 }
  0x64   :  { %573 = vmatprep.subr.mxu0 %v800_v0  ;;  %608 = vmatprep.subr.mxu1 %v800_v0 }
  0x65   :  { %574 = vmatpush3.msra.mxu0 %v299_v30  ;;  %609 = vmatpush3.msra.mxu1 %v390_v46 }
  0x66   :  { %575 = vmatprep.subr.mxu0 %v800_v0  ;;  %610 = vmatprep.subr.mxu1 %v800_v0 }
  0x67   :  { %576 = vmatpush3.msra.mxu0 %v298_v31  ;;  %611 = vmatpush3.msra.mxu1 %v389_v47 }
  0x68   :  { %577 = vmatprep.subr.mxu0 %v800_v0  ;;  %612 = vmatprep.subr.mxu1 %v800_v0 }
  0x69   :  { %578 = vmatpush3.msra.mxu0 %v297_v32  ;;  %613 = vmatpush3.msra.mxu1 %v388_v48 }
  0x6a   :  { %579 = vmatprep.subr.mxu0 %v800_v0  ;;  %614 = vmatprep.subr.mxu1 %v800_v0 }
  0x6b   :  { %580 = vmatpush3.msra.mxu0 %v296_v33  ;;  %615 = vmatpush3.msra.mxu1 %v387_v49 }
  0x6c   :  { %581 = vmatprep.subr.mxu0 %v800_v0  ;;  %616 = vmatprep.subr.mxu1 %v800_v0 }
  0x6d   :  { %582 = vmatpush3.msra.mxu0 %v295_v34  ;;  %617 = vmatpush3.msra.mxu1 %v386_v50 }
  0x6e   :  { %583 = vmatprep.subr.mxu0 %v800_v0  ;;  %618 = vmatprep.subr.mxu1 %v800_v0 }
  0x6f   :  { %584 = vmatpush3.msra.mxu0 %v294_v35  ;;  %619 = vmatpush3.msra.mxu1 %v385_v51 }
  0x70   :  { %585 = vmatprep.subr.mxu0 %v800_v0  ;;  %620 = vmatprep.subr.mxu1 %v800_v0 }
  0x71   :  { %586 = vmatpush3.msra.mxu0 %v293_v36  ;;  %621 = vmatpush3.msra.mxu1 %v384_v5 }
  0x72   :  { %587 = vmatprep.subr.mxu0 %v800_v0  ;;  %622 = vmatprep.subr.mxu1 %v800_v0 }
  0x73   :  { %588 = vmatpush3.msra.mxu0 %v292_v37  ;;  %623 = vmatpush3.msra.mxu1 %v383_v6 }
  0x74   :  { %589 = vmatprep.subr.mxu0 %v800_v0  ;;  %624 = vmatprep.subr.mxu1 %v800_v0 }
  0x75   :  { %590 = vmatpush3.msra.mxu0 %v291_v38  ;;  %625 = vmatpush3.msra.mxu1 %v382_v7 }
 0x114   :  { %v186_v17 = vpop.f32.mrf.mxu0  ;;  %v259_v18 = vpop.f32.mrf.mxu1 }
 0x115   :  { %v260_v19 = vadd.f32 %v259_v18, %v186_v17 }
 0x116   :  { %v547_v20 = vpop.f32.mrf.mxu0  ;;  %v558_v21 = vpop.f32.mrf.mxu1 }
 0x117   :  { %v901_v22 = vadd.f32 %v266_v16, %v260_v19  ;;  %v400_v16 = vsub.s32 4, %v892_v13 }
 0x119   :  { %268 = vadd.xlane.f32.xlu0 %v901_v22  ;;  %v271_v23 = vmul.f32 %v901_v22, %v901_v22  ;;  %v401_v17 = vrot.slane %v898_v15, %v400_v16 }
 0x11d   :  { %272 = vadd.xlane.f32.xlu0 %v271_v23 }
 0x1a2   :  { %v269_v52 = vpop.xlane.xlu0 %268 }
 0x1a3   :  { %v270_v53 = vmul.f32 0.015625, %v269_v52 }
 0x1a5   :  { %v275_v55 = vmul.f32 %v270_v53, %v270_v53  ;;  %v279_v61 = vsub.f32 %v901_v22, %v270_v53 }
 0x1a6   :  { %v273_v54 = vpop.xlane.xlu0 %272 }
 0x1a7   :  { %v274_v56 = vmul.f32 0.015625, %v273_v54 }
 0x1a9   :  { %v276_v57 = vsub.f32 %v274_v56, %v275_v55 }
 0x1ab   :  { %v277_v58 = vadd.f32 1e-05, %v276_v57 }
 0x1ad   :  { %640 = vrsqrt.f32 %v277_v58 }
 0x1ba   :  { %v641_v63 = vpop.eup %640 }
 0x1bb   :  { %v280_v1 = vmul.f32 %v641_v63, %v279_v61 }
 0x1bd   :  { %v285_v3 = vmul.f32 %v284_v62, %v280_v1 }
 0x1bf   :  { %v290_v4 = vadd.f32 %v289_v2, %v285_v3 }
 0x1c1   :  { %592 = vmatmul.mubr.f32.vlgmr.msra.gmra.mxu0 %v290_v4 }
 0x281   :  { %v377_v10 = vpop.f32.mrf.mxu0 }
 0x282   :  { %v378_v11 = vadd.f32 %v377_v10, %v310_v9 }
 0x283   :  { %v593_v12 = vpop.f32.mrf.mxu0 }
 0x284   :  { %v381_v14 = vmax.f32 %v378_v11, 0.0 }
 0x286   :  { %627 = vmatmul.mubr.f32.vlgmr.msra.gmra.mxu1 %v381_v14 }
 0x346   :  { %v468_v18 = vpop.f32.mrf.mxu1 }
 0x347   :  { %v469_v19 = vadd.f32 %v468_v18, %v401_v17 }
 0x348   :  { %v628_v0 = vpop.f32.mrf.mxu1 }
 0x349   :  { %472 = vst [vmem:[#allocation13] sm:$0xff] %v469_v19 }
 0x34a   :  { %773 = shalt.err (!%p770_p6)
}
 0x34b   :  { %482 = dma.vmem_to_hbm [thread:$0]  %s480_s29, 128, %s954_s7, [#allocation4]  }
 0x34c   :  { %790 = dma.done.wait [#allocation4], 128  }
 0x34d   :  { %791 = vsyncadd [#allocation4], 4294967168 }
 0x34e   :  { %486 = vsyncpa [#allocation3], 1 }
 0x34f   :  { %487 = vsyncpa [#allocation6], 1 }
 0x350   :  { %488 = vsyncpa [#allocation9], 1 }
 0x351   :  { %489 = vsyncpa [#allocation12], 1 }
 0x352   :  { %490 = vsyncpa [#allocation4], 1 }

</bundles_post_ra>
